<compile_context>
chip_gen: v7x
topology: tpu7x:2x2x1
jax: 0.10.0
libtpu: 0.0.40
codegen_flags: <defaults>
</compile_context>

<pallas_src>
import math

import jax
import jax.numpy as jnp
from jax.experimental import pallas as pl
from jax.experimental.pallas import tpu as pltpu  # noqa: F401  (kept for parity / future tuning)

B, H, LQ, LK, C = 2, 2, 8, 8, 2  # batch, heads, query_len, key_len, channel
BH = B * H


def _sdpa_kernel(qk_ref, key_t_ref, value_t_ref, mask_ref, out_ref):
    # qk_ref:      (BH, LQ, C)
    # key_t_ref:   (BH, C, LK)   pre-transposed (== model's key.transpose(-2, -1))
    # value_t_ref: (BH, C, LK)   pre-transposed
    # mask_ref:    (BH, 1, LK)   additive mask, broadcast over query positions
    # out_ref:     (BH, LQ, C)
    scale = 1.0 / math.sqrt(C)
    q = qk_ref[...] * scale          # fold 1/sqrt(C) into the small (64-elem) operand
    kt = key_t_ref[...]              # (BH, C, LK)
    vt = value_t_ref[...]            # (BH, C, LK)
    mask = mask_ref[...]             # (BH, 1, LK)

    # scores[bh, q, k] = sum_c q[bh, q, c] * key[bh, k, c]  (+ mask)
    # C=2 contraction unrolled into two broadcast multiplies + adds: VPU only.
    scores = (q[:, :, 0:1] * kt[:, 0:1, :]
              + q[:, :, 1:2] * kt[:, 1:2, :]
              + mask)                                        # (BH, LQ, LK)

    # numerically-stable softmax over the key axis (lanes)
    m = jnp.max(scores, axis=-1, keepdims=True)              # (BH, LQ, 1)
    p = jnp.exp(scores - m)                                  # EUP
    denom = jnp.sum(p, axis=-1, keepdims=True)               # (BH, LQ, 1)

    # out[bh, q, c] = (sum_k p[bh, q, k] * value[bh, k, c]) / denom
    # C=2 unrolled: per channel one multiply + one lane reduction (VPU + XLU).
    o0 = jnp.sum(p * vt[:, 0:1, :], axis=-1, keepdims=True)  # (BH, LQ, 1)
    o1 = jnp.sum(p * vt[:, 1:2, :], axis=-1, keepdims=True)  # (BH, LQ, 1)
    out = jnp.concatenate([o0, o1], axis=-1) / denom         # (BH, LQ, C)

    out_ref[...] = out.astype(out_ref.dtype)


def sdpa_pallas(qk, key, value, attn_mask):
    """qk: (B,H,LQ,C), key: (B,H,LK,C), value: (B,H,LK,C), attn_mask: (B,H,LK)."""
    # TODO(synk): the PyTorch module adds a (B,H,LK) mask to (B,H,LQ,LK) scores,
    # which is not broadcast-compatible and raises in PyTorch; we realize the
    # evident intent and treat it as a per-key additive mask broadcast over queries.
    qk_f = qk.reshape(BH, LQ, C)                           # free reshape
    key_t = jnp.swapaxes(key.reshape(BH, LK, C), 1, 2)     # (BH, C, LK)
    val_t = jnp.swapaxes(value.reshape(BH, LK, C), 1, 2)   # (BH, C, LK)
    mask_f = attn_mask.reshape(BH, 1, LK)                  # free reshape

    full = lambda shape: pl.BlockSpec(shape, lambda: (0,) * len(shape))
    out = pl.pallas_call(
        _sdpa_kernel,
        out_shape=jax.ShapeDtypeStruct((BH, LQ, C), jnp.float32),
        in_specs=[
            full((BH, LQ, C)),
            full((BH, C, LK)),
            full((BH, C, LK)),
            full((BH, 1, LK)),
        ],
        out_specs=full((BH, LQ, C)),
        # Single-core, empty grid: intentionally no dimension_semantics.
    )(qk_f, key_t, val_t, mask_f)
    return out.reshape(B, H, LQ, C)


def reference(qk, key, value, attn_mask):
    mask4 = attn_mask.reshape(B, H, 1, LK)
    scores = jnp.einsum("bhqc,bhkc->bhqk", qk, key) / math.sqrt(C) + mask4
    attn = jax.nn.softmax(scores, axis=-1)
    return jnp.einsum("bhqk,bhkc->bhqc", attn, value)


if __name__ == "__main__":
    root = jax.random.PRNGKey(0)
    k_q, k_k, k_v, k_in, k_m = jax.random.split(root, 5)

    # Deterministic "parameters" (module __init__ shapes); query only supplies size(-1).
    query = jax.random.normal(k_q, (B, H, LQ, C), dtype=jnp.float32)
    key = jax.random.normal(k_k, (B, H, LK, C), dtype=jnp.float32)
    value = jax.random.normal(k_v, (B, H, LQ, C), dtype=jnp.float32)  # used as (B,H,LK,C); LQ==LK here

    # Inputs
    qk = jax.random.normal(k_in, (B, H, LQ, C), dtype=jnp.float32)
    attn_mask = jax.random.normal(k_m, (B, H, LK), dtype=jnp.float32)

    out = sdpa_pallas(qk, key, value, attn_mask)
    out = jax.block_until_ready(out)

    ref = reference(qk, key, value, attn_mask)
    assert out.shape == (B, H, LQ, C)
    assert jnp.allclose(out, ref, atol=1e-5, rtol=1e-5)
    print("KERNEL_OK")
</pallas_src>

<mosaic_0001>
module attributes {stable_mosaic.version = 11 : i64} {
  func.func @_sdpa_kernel(%arg0: memref<4x8x2xf32, #tpu.memory_space<vmem>>, %arg1: memref<4x2x8xf32, #tpu.memory_space<vmem>>, %arg2: memref<4x2x8xf32, #tpu.memory_space<vmem>>, %arg3: memref<4x1x8xf32, #tpu.memory_space<vmem>>, %arg4: memref<4x8x2xf32, #tpu.memory_space<vmem>>) attributes {dimension_semantics = [], scalar_prefetch = 0 : i64, scratch_operands = 0 : i64, tpu.core_type = #tpu.core_type<tc>} {
    %c0 = arith.constant 0 : index
    %c0_0 = arith.constant 0 : index
    %c0_1 = arith.constant 0 : index
    %0 = vector.load %arg0[%c0, %c0_0, %c0_1] : memref<4x8x2xf32, #tpu.memory_space<vmem>>, vector<4x8x2xf32>
    %cst = arith.constant 0.707106769 : f32
    %1 = vector.broadcast %cst : f32 to vector<4x8x2xf32>
    %2 = arith.mulf %0, %1 : vector<4x8x2xf32>
    %c0_2 = arith.constant 0 : index
    %c0_3 = arith.constant 0 : index
    %c0_4 = arith.constant 0 : index
    %3 = vector.load %arg1[%c0_2, %c0_3, %c0_4] : memref<4x2x8xf32, #tpu.memory_space<vmem>>, vector<4x2x8xf32>
    %c0_5 = arith.constant 0 : index
    %c0_6 = arith.constant 0 : index
    %c0_7 = arith.constant 0 : index
    %4 = vector.load %arg2[%c0_5, %c0_6, %c0_7] : memref<4x2x8xf32, #tpu.memory_space<vmem>>, vector<4x2x8xf32>
    %c0_8 = arith.constant 0 : index
    %c0_9 = arith.constant 0 : index
    %c0_10 = arith.constant 0 : index
    %5 = vector.load %arg3[%c0_8, %c0_9, %c0_10] : memref<4x1x8xf32, #tpu.memory_space<vmem>>, vector<4x1x8xf32>
    %6 = vector.extract_strided_slice %2 {offsets = [0, 0, 0], sizes = [4, 8, 1], strides = [1, 1, 1]} : vector<4x8x2xf32> to vector<4x8x1xf32>
    %7 = vector.extract_strided_slice %3 {offsets = [0, 0, 0], sizes = [4, 1, 8], strides = [1, 1, 1]} : vector<4x2x8xf32> to vector<4x1x8xf32>
    %8 = vector.broadcast %6 : vector<4x8x1xf32> to vector<4x8x8xf32>
    %9 = vector.broadcast %7 : vector<4x1x8xf32> to vector<4x8x8xf32>
    %10 = arith.mulf %8, %9 : vector<4x8x8xf32>
    %11 = vector.extract_strided_slice %2 {offsets = [0, 0, 1], sizes = [4, 8, 1], strides = [1, 1, 1]} : vector<4x8x2xf32> to vector<4x8x1xf32>
    %12 = vector.extract_strided_slice %3 {offsets = [0, 1, 0], sizes = [4, 1, 8], strides = [1, 1, 1]} : vector<4x2x8xf32> to vector<4x1x8xf32>
    %13 = vector.broadcast %11 : vector<4x8x1xf32> to vector<4x8x8xf32>
    %14 = vector.broadcast %12 : vector<4x1x8xf32> to vector<4x8x8xf32>
    %15 = arith.mulf %13, %14 : vector<4x8x8xf32>
    %16 = arith.addf %10, %15 : vector<4x8x8xf32>
    %17 = vector.broadcast %5 : vector<4x1x8xf32> to vector<4x8x8xf32>
    %18 = arith.addf %16, %17 : vector<4x8x8xf32>
    %cst_11 = arith.constant dense<0xFF800000> : vector<4x8xf32>
    %19 = vector.multi_reduction <maximumf>, %18, %cst_11 [2] : vector<4x8x8xf32> to vector<4x8xf32>
    %20 = vector.shape_cast %19 : vector<4x8xf32> to vector<4x8x1xf32>
    %21 = vector.broadcast %20 : vector<4x8x1xf32> to vector<4x8x8xf32>
    %22 = arith.subf %18, %21 : vector<4x8x8xf32>
    %23 = math.exp %22 : vector<4x8x8xf32>
    %cst_12 = arith.constant dense<0.000000e+00> : vector<4x8xf32>
    %24 = vector.multi_reduction <add>, %23, %cst_12 [2] : vector<4x8x8xf32> to vector<4x8xf32>
    %25 = vector.shape_cast %24 : vector<4x8xf32> to vector<4x8x1xf32>
    %26 = vector.extract_strided_slice %4 {offsets = [0, 0, 0], sizes = [4, 1, 8], strides = [1, 1, 1]} : vector<4x2x8xf32> to vector<4x1x8xf32>
    %27 = vector.broadcast %26 : vector<4x1x8xf32> to vector<4x8x8xf32>
    %28 = arith.mulf %23, %27 : vector<4x8x8xf32>
    %cst_13 = arith.constant dense<0.000000e+00> : vector<4x8xf32>
    %29 = vector.multi_reduction <add>, %28, %cst_13 [2] : vector<4x8x8xf32> to vector<4x8xf32>
    %30 = vector.shape_cast %29 : vector<4x8xf32> to vector<4x8x1xf32>
    %31 = vector.extract_strided_slice %4 {offsets = [0, 1, 0], sizes = [4, 1, 8], strides = [1, 1, 1]} : vector<4x2x8xf32> to vector<4x1x8xf32>
    %32 = vector.broadcast %31 : vector<4x1x8xf32> to vector<4x8x8xf32>
    %33 = arith.mulf %23, %32 : vector<4x8x8xf32>
    %cst_14 = arith.constant dense<0.000000e+00> : vector<4x8xf32>
    %34 = vector.multi_reduction <add>, %33, %cst_14 [2] : vector<4x8x8xf32> to vector<4x8xf32>
    %35 = vector.shape_cast %34 : vector<4x8xf32> to vector<4x8x1xf32>
    %36 = tpu.concatenate %30, %35 in 2 : vector<4x8x1xf32>, vector<4x8x1xf32> -> vector<4x8x2xf32>
    %37 = vector.broadcast %25 : vector<4x8x1xf32> to vector<4x8x2xf32>
    %38 = arith.divf %36, %37 : vector<4x8x2xf32>
    %c0_15 = arith.constant 0 : index
    %c0_16 = arith.constant 0 : index
    %c0_17 = arith.constant 0 : index
    %39 = vector.load %arg4[%c0_15, %c0_16, %c0_17] : memref<4x8x2xf32, #tpu.memory_space<vmem>>, vector<4x8x2xf32>
    tpu.vector_store %arg4[%c0_15, %c0_16, %c0_17], %38 {strides = array<i32>} : memref<4x8x2xf32, #tpu.memory_space<vmem>>, vector<4x8x2xf32>,
    return
  }
}

</mosaic_0001>

<bundles_post_ra>
// kernel: tpu_custom_call.1
= control target key start
LH: loop header
LB: loop body
LE: loop exit
PB: predicated region body
PF: predicated region fallthrough
CT: control target
= control target key end

     0   :  { %v294_v0 = vmov 0   ;;  %v295_v9 = vmov 1   ;;  %v57_v10 = vlaneseq  ;;  %vm145_vm0 = vcmask 64512   ;;  %s425_s0 = inlined_call_operand.vmem [shape: f32[4,8,2], index: 0, kind: input, shape index: {}]   ;;  %s426_s1 = inlined_call_operand.vmem [shape: f32[4,2,8], index: 1, kind: input, shape index: {}]   ;;  %s427_s3 = inlined_call_operand.vmem [shape: f32[4,1,8], index: 3, kind: input, shape index: {}]   ;;  %s428_s2 = inlined_call_operand.vmem [shape: f32[4,2,8], index: 2, kind: input, shape index: {}]   ;;  %s429_s4 = inlined_call_operand.vmem [shape: f32[4,8,2], index: 4, kind: output, shape index: {}]  }
   0x1   :  { %275 = vset.pattern.permute.xlu1 %v294_v0  ;;  %274 = vset.pattern.permute.xlu0 %v294_v0  ;;  %v19_v1 = vld [vmem:[%s425_s0 + $0x10] sm:$0xff]  ;;  %v17_v2 = vld [vmem:[%s425_s0] sm:$0xff]  ;;  %v20_v3 = vld [vmem:[%s425_s0 + $0x18] sm:$0xff]  ;;  %vm246_vm1 = vcmask 7168   ;;  %vm259_vm2 = vcmask 15360  }
   0x2   :  { %v23_v4 = vmul.f32 0.70710677, %v19_v1  ;;  %v21_v5 = vmul.f32 0.70710677, %v17_v2  ;;  %v18_v6 = vld [vmem:[%s425_s0 + $0x8] sm:$0xff]  ;;  %v58_v11 = vshrl.u32 %v57_v10, 7 }
   0x3   :  { %v24_v7 = vmul.f32 0.70710677, %v20_v3  ;;  %v22_v8 = vmul.f32 0.70710677, %v18_v6  ;;  %v25_v16 = vld [vmem:[%s426_s1] sm:$0x3] }
   0x4   :  { %49 = vperm.xlu1 %275, %v23_v4   ;;  %39 = vperm.xlu0 %274, %v21_v5   ;;  %v333_v14 = vsub.s32 0, %v58_v11  ;;  %v335_v15 = vsub.s32 1, %v58_v11  ;;  %v26_v17 = vld [vmem:[%s426_s1 + $0x2] sm:$0x3]  ;;  %v27_v20 = vld [vmem:[%s426_s1 + $0x4] sm:$0x3] }
   0x5   :  { %v28_v22 = vld [vmem:[%s426_s1 + $0x6] sm:$0x3]  ;;  %v269_v36 = vld [vmem:[%s427_s3 + $0x1] ss:$0 sm:$0xff]  ;;  %v268_v37 = vld [vmem:[%s427_s3] ss:$0 sm:$0xff] }
   0x6   :  { %v60_v21 = vrot.slane %v25_v16, %v333_v14  ;;  %v64_v23 = vrot.slane %v26_v17, %v333_v14  ;;  %v100_v24 = vrot.slane %v26_v17, %v335_v15  ;;  %v96_v25 = vrot.slane %v25_v16, %v335_v15  ;;  %v270_v48 = vld [vmem:[%s427_s3 + $0x2] ss:$0 sm:$0xff]  ;;  %v271_v49 = vld [vmem:[%s427_s3 + $0x3] ss:$0 sm:$0xff]  ;;  %v32_v16 = vld [vmem:[%s428_s2 + $0x6] sm:$0x3] }
   0x7   :  { %v68_v26 = vrot.slane %v27_v20, %v333_v14  ;;  %v72_v27 = vrot.slane %v28_v22, %v333_v14  ;;  %v104_v30 = vrot.slane %v27_v20, %v335_v15  ;;  %v108_v31 = vrot.slane %v28_v22, %v335_v15  ;;  %v30_v6 = vld [vmem:[%s428_s2 + $0x2] sm:$0x3]  ;;  %v31_v17 = vld [vmem:[%s428_s2 + $0x4] sm:$0x3] }
   0x8   :  { %54 = vperm.xlu1 %275, %v24_v7   ;;  %44 = vperm.xlu0 %274, %v22_v8  }
   0xc   :  { %277 = vset.pattern.permute.xlu1 %v295_v9  ;;  %276 = vset.pattern.permute.xlu0 %v295_v9 }
   0xd   :  { %82 = vperm.xlu1 %277, %v22_v8   ;;  %78 = vperm.xlu0 %276, %v21_v5  }
  0x11   :  { %86 = vperm.xlu1 %277, %v23_v4   ;;  %90 = vperm.xlu0 %276, %v24_v7   ;;  %v29_v7 = vld [vmem:[%s428_s2] sm:$0x3] }
  0x83   :  { %v50_v12 = vpop.permute.xlu1 %49  ;;  %v40_v13 = vpop.permute.xlu0 %39 }
  0x84   :  { %v73_v32 = vmul.f32 %v60_v21, %v40_v13  ;;  %v75_v40 = vmul.f32 %v68_v26, %v50_v12  ;;  %v189_v12 = vrot.slane %v30_v6, %v333_v14  ;;  %v185_v13 = vrot.slane %v29_v7, %v333_v14 }
  0x85   :  { %v197_v21 = vrot.slane %v32_v16, %v333_v14  ;;  %v221_v26 = vrot.slane %v30_v6, %v335_v15 }
  0x87   :  { %v55_v18 = vpop.permute.xlu1 %54  ;;  %v45_v19 = vpop.permute.xlu0 %44 }
  0x88   :  { %v74_v33 = vmul.f32 %v64_v23, %v45_v19  ;;  %v76_v41 = vmul.f32 %v72_v27, %v55_v18  ;;  %v217_v27 = vrot.slane %v29_v7, %v335_v15 }
  0x8c   :  { %v83_v28 = vpop.permute.xlu1 %82  ;;  %v79_v29 = vpop.permute.xlu0 %78 }
  0x8d   :  { %v110_v34 = vmul.f32 %v100_v24, %v83_v28  ;;  %v109_v35 = vmul.f32 %v96_v25, %v79_v29  ;;  %v193_v25 = vrot.slane %v31_v17, %v333_v14 }
  0x8f   :  { %v114_v38 = vadd.f32 %v110_v34, %v74_v33  ;;  %v113_v39 = vadd.f32 %v109_v35, %v73_v32  ;;  %v229_v32 = vrot.slane %v32_v16, %v335_v15  ;;  %v225_v33 = vrot.slane %v31_v17, %v335_v15 }
  0x90   :  { %v87_v42 = vpop.permute.xlu1 %86  ;;  %v91_v43 = vpop.permute.xlu0 %90 }
  0x91   :  { %v111_v44 = vmul.f32 %v104_v30, %v87_v42  ;;  %v112_v45 = vmul.f32 %v108_v31, %v91_v43  ;;  %v142_v46 = vadd.f32 %v269_v36, %v114_v38  ;;  %v141_v47 = vadd.f32 %v268_v37, %v113_v39 }
  0x93   :  { %v115_v50 = vadd.f32 %v111_v44, %v75_v40  ;;  %v116_v51 = vadd.f32 %v112_v45, %v76_v41  ;;  %v149_v52 = vsel %vm145_vm0, %v142_v46, -inf  ;;  %v146_v53 = vsel %vm145_vm0, %v141_v47, -inf }
  0x94   :  { %150 = vmax.xlane.f32.xlu0 %v149_v52  ;;  %147 = vmax.xlane.f32.xlu1 %v146_v53 }
  0x95   :  { %v143_v54 = vadd.f32 %v270_v48, %v115_v50  ;;  %v144_v55 = vadd.f32 %v271_v49, %v116_v51 }
  0x97   :  { %v152_v56 = vsel %vm145_vm0, %v143_v54, -inf  ;;  %v155_v57 = vsel %vm145_vm0, %v144_v55, -inf }
  0x98   :  { %153 = vmax.xlane.f32.xlu0 %v152_v56  ;;  %156 = vmax.xlane.f32.xlu1 %v155_v57 }
 0x121   :  { %v148_v58 = vpop.xlane.xlu1 %147  ;;  %v151_v59 = vpop.xlane.xlu0 %150 }
 0x122   :  { %v158_v60 = vsub.f32 %v141_v47, %v148_v58  ;;  %v159_v61 = vsub.f32 %v142_v46, %v151_v59 }
 0x124   :  { %v162_v62 = vmul.f32 1.442695, %v158_v60  ;;  %v164_v63 = vmul.f32 1.442695, %v159_v61 }
 0x125   :  { %v157_v0 = vpop.xlane.xlu1 %156  ;;  %v154_v1 = vpop.xlane.xlu0 %153 }
 0x126   :  { %278 = vpow2.f32 %v162_v62  ;;  %v161_v2 = vsub.f32 %v144_v55, %v157_v0  ;;  %v160_v3 = vsub.f32 %v143_v54, %v154_v1 }
 0x127   :  { %280 = vpow2.f32 %v164_v63 }
 0x128   :  { %v168_v4 = vmul.f32 1.442695, %v161_v2  ;;  %v166_v5 = vmul.f32 1.442695, %v160_v3 }
 0x12a   :  { %282 = vpow2.f32 %v168_v4 }
 0x12b   :  { %284 = vpow2.f32 %v166_v5 }
 0x130   :  { %v279_v8 = vpop.eup %278 }
 0x131   :  { %v281_v9 = vpop.eup %280  ;;  %v170_v10 = vsel %vm145_vm0, %v279_v8, 0.0  ;;  %v198_v24 = vmul.f32 %v279_v8, %v185_v13  ;;  %v230_v36 = vmul.f32 %v279_v8, %v217_v27 }
 0x132   :  { %171 = vadd.xlane.f32.xlu0 %v170_v10  ;;  %v173_v11 = vsel %vm145_vm0, %v281_v9, 0.0  ;;  %v199_v23 = vmul.f32 %v281_v9, %v189_v12  ;;  %v231_v35 = vmul.f32 %v281_v9, %v221_v26 }
 0x133   :  { %174 = vadd.xlane.f32.xlu1 %v173_v11  ;;  %v202_v29 = vsel %vm145_vm0, %v198_v24, 0.0  ;;  %v234_v38 = vsel %vm145_vm0, %v230_v36, 0.0 }
 0x134   :  { %v283_v18 = vpop.eup %282  ;;  %v205_v28 = vsel %vm145_vm0, %v199_v23, 0.0  ;;  %v237_v37 = vsel %vm145_vm0, %v231_v35, 0.0 }
 0x135   :  { %v285_v19 = vpop.eup %284  ;;  %v179_v20 = vsel %vm145_vm0, %v283_v18, 0.0  ;;  %v201_v30 = vmul.f32 %v283_v18, %v197_v21  ;;  %v233_v39 = vmul.f32 %v283_v18, %v229_v32 }
 0x136   :  { %v176_v22 = vsel %vm145_vm0, %v285_v19, 0.0  ;;  %v200_v31 = vmul.f32 %v285_v19, %v193_v25  ;;  %v232_v40 = vmul.f32 %v285_v19, %v225_v33 }
 0x137   :  { %180 = vadd.xlane.f32.xlu1 %v179_v20  ;;  %177 = vadd.xlane.f32.xlu0 %v176_v22  ;;  %v211_v14 = vsel %vm145_vm0, %v201_v30, 0.0  ;;  %v243_v41 = vsel %vm145_vm0, %v233_v39, 0.0 }
 0x138   :  { %v208_v34 = vsel %vm145_vm0, %v200_v31, 0.0  ;;  %v240_v15 = vsel %vm145_vm0, %v232_v40, 0.0 }
 0x13b   :  { %206 = vadd.xlane.f32.xlu1 %v205_v28  ;;  %203 = vadd.xlane.f32.xlu0 %v202_v29 }
 0x13f   :  { %212 = vadd.xlane.f32.xlu1 %v211_v14  ;;  %209 = vadd.xlane.f32.xlu0 %v208_v34 }
 0x143   :  { %238 = vadd.xlane.f32.xlu1 %v237_v37  ;;  %235 = vadd.xlane.f32.xlu0 %v234_v38 }
 0x147   :  { %244 = vadd.xlane.f32.xlu1 %v243_v41  ;;  %241 = vadd.xlane.f32.xlu0 %v240_v15 }
 0x1bf   :  { %v172_v42 = vpop.xlane.xlu0 %171 }
 0x1c0   :  { %v175_v43 = vpop.xlane.xlu1 %174  ;;  %286 = vrcp.f32 %v172_v42 }
 0x1c1   :  { %288 = vrcp.f32 %v175_v43 }
 0x1c4   :  { %v181_v44 = vpop.xlane.xlu1 %180  ;;  %v178_v45 = vpop.xlane.xlu0 %177 }
 0x1c5   :  { %290 = vrcp.f32 %v181_v44 }
 0x1c6   :  { %292 = vrcp.f32 %v178_v45 }
 0x1c8   :  { %v207_v46 = vpop.xlane.xlu1 %206  ;;  %v204_v47 = vpop.xlane.xlu0 %203 }
 0x1ca   :  { %v287_v50 = vpop.eup %286 }
 0x1cb   :  { %v289_v53 = vpop.eup %288 }
 0x1cc   :  { %v213_v48 = vpop.xlane.xlu1 %212  ;;  %v210_v49 = vpop.xlane.xlu0 %209 }
 0x1cf   :  { %v291_v58 = vpop.eup %290 }
 0x1d0   :  { %v239_v51 = vpop.xlane.xlu1 %238  ;;  %v236_v52 = vpop.xlane.xlu0 %235 }
 0x1d1   :  { %v248_v54 = vsel %vm246_vm1, %v207_v46, %v239_v51  ;;  %v247_v55 = vsel %vm246_vm1, %v204_v47, %v236_v52  ;;  %v293_v61 = vpop.eup %292 }
 0x1d2   :  { %v254_v56 = vmul.f32 %v289_v53, %v248_v54  ;;  %v252_v57 = vmul.f32 %v287_v50, %v247_v55 }
 0x1d4   :  { %261 = vst.msk [vmem:[%s429_s4 + $0x8] sm:$0xff] %vm259_vm2, %v254_v56  ;;  %260 = vst.msk [vmem:[%s429_s4] sm:$0xff] %vm259_vm2, %v252_v57  ;;  %v245_v59 = vpop.xlane.xlu1 %244  ;;  %v242_v60 = vpop.xlane.xlu0 %241 }
 0x1d5   :  { %v250_v62 = vsel %vm246_vm1, %v213_v48, %v245_v59  ;;  %v249_v63 = vsel %vm246_vm1, %v210_v49, %v242_v60 }
 0x1d6   :  { %v258_v0 = vmul.f32 %v291_v58, %v250_v62  ;;  %v256_v1 = vmul.f32 %v293_v61, %v249_v63 }
 0x1d8   :  { %263 = vst.msk [vmem:[%s429_s4 + $0x18] sm:$0xff] %vm259_vm2, %v258_v0  ;;  %262 = vst.msk [vmem:[%s429_s4 + $0x10] sm:$0xff] %vm259_vm2, %v256_v1 }

</bundles_post_ra>
